<compile_context>
chip_gen: v7x
topology: tpu7x:2x2x1
jax: 0.10.0
libtpu: 0.0.40
codegen_flags: <defaults>
</compile_context>

<pallas_src>
import jax
import jax.numpy as jnp
from jax.experimental import pallas as pl
from jax.experimental.pallas import tpu as pltpu

BS = 4  # block_size (the torch module asserts block_size == 4)


def _space_to_depth_kernel(s_ref, x_ref, o_ref):
    # s_ref: (Wc, Wc)      column-selection matrix (resident; DMA'd once)
    # x_ref: (R, 4*W)      R rows (r = c*Ho + ho); lane layout is (bh, w)
    # o_ref: (16, R, Wo)   group-major output slab (torch memory order)
    R, W4 = x_ref.shape
    W = W4 // BS
    Wo = W // BS
    Wc = s_ref.shape[0]          # lane-chunk width (== W when not chunking)
    Wco = Wc // BS
    n_chunks = W // Wc
    compute_dt = s_ref.dtype

    sel = s_ref[...]
    for bh in range(BS):
        base = bh * W            # aligned lane offset (vreg-aligned when W % 128 == 0)
        for ck in range(n_chunks):
            lo = base + ck * Wc
            cols = x_ref[:, lo:lo + Wc].astype(compute_dt)
            # One lane-dense selection matmul per (bh, chunk); result columns
            # ordered (bw, wo-within-chunk). One 1.0 per column => exact.
            res = jnp.dot(cols, sel, preferred_element_type=jnp.float32)
            for bw in range(BS):
                o_ref[bh * BS + bw, :, ck * Wco:(ck + 1) * Wco] = (
                    res[:, bw * Wco:(bw + 1) * Wco].astype(o_ref.dtype))


def _compute_dtype(dt):
    dt = jnp.dtype(dt)
    if dt == jnp.float32 or dt == jnp.bfloat16:
        return dt
    if dt.itemsize == 1 and "float8" in dt.name:
        # fp8: exactly representable in bf16; avoids 4x VMEM expansion vs f32.
        return jnp.dtype(jnp.bfloat16)
    # TODO(synk): int8/uint8 would be better served by a u32-bitcast + VPU
    # shift/mask de-interleave (no MXU, works on v7x which lacks int MXU) or
    # the int8 MXU on v5e/v6e; the f32 selection matmul is exact only for
    # |x| <= 2^24 (fine for image-range integers).
    return jnp.dtype(jnp.float32)


def _vmem_budgets():
    """(vmem_limit_bytes, input_block_budget_bytes), generation-aware.

    Total residency ~= 2*(input block) + 2*(output block, same bytes) +
    selection matrix + matmul intermediates ~= 4-5x the input-block budget.
    """
    mib = 1024 * 1024
    vmem_cap = None
    try:
        vmem_cap = int(getattr(pltpu.get_tpu_info(), "vmem_capacity_bytes", 0)) or None
    except Exception:
        vmem_cap = None
    if vmem_cap is not None and vmem_cap > 64 * mib:
        # v5e / v6e class: 128 MiB physical VMEM per TensorCore.
        return 96 * mib, 8 * mib
    # v7x class (64 MiB per TC) or unknown: stay conservative.
    return 48 * mib, 4 * mib


def _pick_row_tile(rows, bytes_per_row, budget_bytes):
    """Row tile R (multiple of 8, or the full extent) whose input block fits
    the budget.  Never silently falls back to the full slab when it does not
    fit; a non-dividing R is allowed (Pallas clips edge blocks)."""
    if rows * bytes_per_row <= budget_bytes or rows <= 8:
        return rows
    max_r = (budget_bytes // bytes_per_row) // 8 * 8
    max_r = max(8, min(max_r, (rows // 8) * 8))
    best = None
    for r in range(8, max_r + 1, 8):     # prefer a divisor (no ragged edge)
        if rows % r == 0:
            best = r
    return best if best is not None else max_r


def space_to_depth(x):
    N, C, H, W = x.shape
    assert H % BS == 0 and W % BS == 0
    Ho, Wo = H // BS, W // BS
    rows = C * Ho                          # combined (c, ho) row axis

    dt = jnp.dtype(x.dtype)
    compute_dt = _compute_dtype(dt)

    # Lane-chunk width for the selection matmul (caps MXU work for large W).
    Wc = 512 if W % 512 == 0 else W
    Wco = Wc // BS
    # sel[j, k] = 1  iff  j == 4*(k mod Wco) + (k div Wco): output column
    # k = bw*Wco + wo picks input column 4*wo + bw (within a lane chunk).
    k = jnp.arange(Wc, dtype=jnp.int32)
    src = BS * (k % Wco) + (k // Wco)
    sel = (jnp.arange(Wc, dtype=jnp.int32)[:, None] == src[None, :]).astype(compute_dt)

    vmem_limit, in_block_budget = _vmem_budgets()
    R = _pick_row_tile(rows, BS * W * dt.itemsize, in_block_budget)
    n_r = pl.cdiv(rows, R)

    # Free reshape: row r = c*Ho + ho, lane index = bh*W + w (same bytes).
    x_flat = x.reshape(N, rows, BS * W)

    out = pl.pallas_call(
        _space_to_depth_kernel,
        out_shape=jax.ShapeDtypeStruct((N, BS * BS, rows, Wo), x.dtype),
        grid=(N, n_r),
        in_specs=[
            # Constant block index => DMA'd to VMEM once, resident thereafter.
            pl.BlockSpec((Wc, Wc), lambda n, r: (0, 0)),
            pl.BlockSpec((None, R, BS * W), lambda n, r: (n, r, 0)),
        ],
        out_specs=pl.BlockSpec((None, BS * BS, R, Wo), lambda n, r: (n, 0, r, 0)),
        compiler_params=pltpu.CompilerParams(
            dimension_semantics=("parallel", "parallel"),
            vmem_limit_bytes=vmem_limit,
        ),
    )(sel, x_flat)

    # (N, 16, C*Ho, Wo) is memory-identical to torch's (N, 16*C, Ho, Wo).
    return out.reshape(N, C * BS * BS, Ho, Wo)


def _reference(x):
    # pure-JAX mirror of the torch forward
    N, C, H, W = x.shape
    y = x.reshape(N, C, H // BS, BS, W // BS, BS)
    y = jnp.transpose(y, (0, 3, 5, 1, 2, 4))
    return y.reshape(N, C * BS * BS, H // BS, W // BS)


if __name__ == "__main__":
    key = jax.random.PRNGKey(0)
    x = jax.random.normal(key, (2, 4, 16, 16), dtype=jnp.float32)

    out = jax.block_until_ready(space_to_depth(x))
    ref = _reference(x)

    assert out.shape == (2, 4 * BS * BS, 4, 4), out.shape
    assert out.dtype == x.dtype
    assert bool(jnp.allclose(out, ref, atol=0.0, rtol=0.0)), "mismatch vs reference"
    print("KERNEL_OK")
</pallas_src>

<mosaic_0001>
module attributes {stable_mosaic.version = 11 : i64} {
  func.func @_space_to_depth_kernel(%arg0: i32, %arg1: i32, %arg2: memref<16x16xf32, #tpu.memory_space<vmem>>, %arg3: memref<1x16x64xf32, #tpu.memory_space<vmem>>, %arg4: memref<1x16x16x4xf32, #tpu.memory_space<vmem>>) attributes {dimension_semantics = [#tpu.dimension_semantics<parallel>, #tpu.dimension_semantics<parallel>], iteration_bounds = array<i64: 2, 1>, scalar_prefetch = 0 : i64, scratch_operands = 0 : i64, tpu.core_type = #tpu.core_type<tc>, window_params = [{pipeline_mode = #tpu.pipeline_mode<synchronous>, transform_indices = @transform_0, window_bounds = array<i64: 16, 16>}, {transform_indices = @transform_1, window_bounds = array<i64: 1, 16, 64>}, {transform_indices = @transform_2, window_bounds = array<i64: 1, 16, 16, 4>}]} {
    %c0 = arith.constant 0 : index
    %c0_0 = arith.constant 0 : index
    %0 = vector.load %arg2[%c0, %c0_0] : memref<16x16xf32, #tpu.memory_space<vmem>>, vector<16x16xf32>
    %c0_1 = arith.constant 0 : index
    %c0_2 = arith.constant 0 : index
    %c0_3 = arith.constant 0 : index
    %1 = vector.load %arg3[%c0_1, %c0_2, %c0_3] : memref<1x16x64xf32, #tpu.memory_space<vmem>>, vector<1x16x16xf32>
    %2 = vector.shape_cast %1 : vector<1x16x16xf32> to vector<16x16xf32>
    %cst = arith.constant dense<0.000000e+00> : vector<16x16xf32>
    %3 = tpu.matmul %2, %0, %cst {dimension_numbers = #tpu.dot_dimension_numbers<[1], [0], [0], [1], [0, 0, 1, 1], [], []>} : vector<16x16xf32>, vector<16x16xf32>, vector<16x16xf32> -> vector<16x16xf32>
    %4 = vector.extract_strided_slice %3 {offsets = [0, 0], sizes = [16, 4], strides = [1, 1]} : vector<16x16xf32> to vector<16x4xf32>
    %c0_4 = arith.constant 0 : index
    %c0_5 = arith.constant 0 : index
    %c0_6 = arith.constant 0 : index
    %c0_7 = arith.constant 0 : index
    %5 = vector.load %arg4[%c0_4, %c0_5, %c0_6, %c0_7] : memref<1x16x16x4xf32, #tpu.memory_space<vmem>>, vector<1x1x16x4xf32>
    %6 = vector.shape_cast %5 : vector<1x1x16x4xf32> to vector<16x4xf32>
    %7 = vector.shape_cast %4 : vector<16x4xf32> to vector<1x1x16x4xf32>
    tpu.vector_store %arg4[%c0_4, %c0_5, %c0_6, %c0_7], %7 {strides = array<i32>} : memref<1x16x16x4xf32, #tpu.memory_space<vmem>>, vector<1x1x16x4xf32>,
    %8 = vector.extract_strided_slice %3 {offsets = [0, 4], sizes = [16, 4], strides = [1, 1]} : vector<16x16xf32> to vector<16x4xf32>
    %c0_8 = arith.constant 0 : index
    %c1 = arith.constant 1 : index
    %c0_9 = arith.constant 0 : index
    %c0_10 = arith.constant 0 : index
    %9 = vector.load %arg4[%c0_8, %c1, %c0_9, %c0_10] : memref<1x16x16x4xf32, #tpu.memory_space<vmem>>, vector<1x1x16x4xf32>
    %10 = vector.shape_cast %9 : vector<1x1x16x4xf32> to vector<16x4xf32>
    %11 = vector.shape_cast %8 : vector<16x4xf32> to vector<1x1x16x4xf32>
    tpu.vector_store %arg4[%c0_8, %c1, %c0_9, %c0_10], %11 {strides = array<i32>} : memref<1x16x16x4xf32, #tpu.memory_space<vmem>>, vector<1x1x16x4xf32>,
    %12 = vector.extract_strided_slice %3 {offsets = [0, 8], sizes = [16, 4], strides = [1, 1]} : vector<16x16xf32> to vector<16x4xf32>
    %c0_11 = arith.constant 0 : index
    %c2 = arith.constant 2 : index
    %c0_12 = arith.constant 0 : index
    %c0_13 = arith.constant 0 : index
    %13 = vector.load %arg4[%c0_11, %c2, %c0_12, %c0_13] : memref<1x16x16x4xf32, #tpu.memory_space<vmem>>, vector<1x1x16x4xf32>
    %14 = vector.shape_cast %13 : vector<1x1x16x4xf32> to vector<16x4xf32>
    %15 = vector.shape_cast %12 : vector<16x4xf32> to vector<1x1x16x4xf32>
    tpu.vector_store %arg4[%c0_11, %c2, %c0_12, %c0_13], %15 {strides = array<i32>} : memref<1x16x16x4xf32, #tpu.memory_space<vmem>>, vector<1x1x16x4xf32>,
    %16 = vector.extract_strided_slice %3 {offsets = [0, 12], sizes = [16, 4], strides = [1, 1]} : vector<16x16xf32> to vector<16x4xf32>
    %c0_14 = arith.constant 0 : index
    %c3 = arith.constant 3 : index
    %c0_15 = arith.constant 0 : index
    %c0_16 = arith.constant 0 : index
    %17 = vector.load %arg4[%c0_14, %c3, %c0_15, %c0_16] : memref<1x16x16x4xf32, #tpu.memory_space<vmem>>, vector<1x1x16x4xf32>
    %18 = vector.shape_cast %17 : vector<1x1x16x4xf32> to vector<16x4xf32>
    %19 = vector.shape_cast %16 : vector<16x4xf32> to vector<1x1x16x4xf32>
    tpu.vector_store %arg4[%c0_14, %c3, %c0_15, %c0_16], %19 {strides = array<i32>} : memref<1x16x16x4xf32, #tpu.memory_space<vmem>>, vector<1x1x16x4xf32>,
    %c0_17 = arith.constant 0 : index
    %c0_18 = arith.constant 0 : index
    %c16 = arith.constant 16 : index
    %20 = vector.load %arg3[%c0_17, %c0_18, %c16] : memref<1x16x64xf32, #tpu.memory_space<vmem>>, vector<1x16x16xf32>
    %21 = vector.shape_cast %20 : vector<1x16x16xf32> to vector<16x16xf32>
    %cst_19 = arith.constant dense<0.000000e+00> : vector<16x16xf32>
    %22 = tpu.matmul %21, %0, %cst_19 {dimension_numbers = #tpu.dot_dimension_numbers<[1], [0], [0], [1], [0, 0, 1, 1], [], []>} : vector<16x16xf32>, vector<16x16xf32>, vector<16x16xf32> -> vector<16x16xf32>
    %23 = vector.extract_strided_slice %22 {offsets = [0, 0], sizes = [16, 4], strides = [1, 1]} : vector<16x16xf32> to vector<16x4xf32>
    %c0_20 = arith.constant 0 : index
    %c4 = arith.constant 4 : index
    %c0_21 = arith.constant 0 : index
    %c0_22 = arith.constant 0 : index
    %24 = vector.load %arg4[%c0_20, %c4, %c0_21, %c0_22] : memref<1x16x16x4xf32, #tpu.memory_space<vmem>>, vector<1x1x16x4xf32>
    %25 = vector.shape_cast %24 : vector<1x1x16x4xf32> to vector<16x4xf32>
    %26 = vector.shape_cast %23 : vector<16x4xf32> to vector<1x1x16x4xf32>
    tpu.vector_store %arg4[%c0_20, %c4, %c0_21, %c0_22], %26 {strides = array<i32>} : memref<1x16x16x4xf32, #tpu.memory_space<vmem>>, vector<1x1x16x4xf32>,
    %27 = vector.extract_strided_slice %22 {offsets = [0, 4], sizes = [16, 4], strides = [1, 1]} : vector<16x16xf32> to vector<16x4xf32>
    %c0_23 = arith.constant 0 : index
    %c5 = arith.constant 5 : index
    %c0_24 = arith.constant 0 : index
    %c0_25 = arith.constant 0 : index
    %28 = vector.load %arg4[%c0_23, %c5, %c0_24, %c0_25] : memref<1x16x16x4xf32, #tpu.memory_space<vmem>>, vector<1x1x16x4xf32>
    %29 = vector.shape_cast %28 : vector<1x1x16x4xf32> to vector<16x4xf32>
    %30 = vector.shape_cast %27 : vector<16x4xf32> to vector<1x1x16x4xf32>
    tpu.vector_store %arg4[%c0_23, %c5, %c0_24, %c0_25], %30 {strides = array<i32>} : memref<1x16x16x4xf32, #tpu.memory_space<vmem>>, vector<1x1x16x4xf32>,
    %31 = vector.extract_strided_slice %22 {offsets = [0, 8], sizes = [16, 4], strides = [1, 1]} : vector<16x16xf32> to vector<16x4xf32>
    %c0_26 = arith.constant 0 : index
    %c6 = arith.constant 6 : index
    %c0_27 = arith.constant 0 : index
    %c0_28 = arith.constant 0 : index
    %32 = vector.load %arg4[%c0_26, %c6, %c0_27, %c0_28] : memref<1x16x16x4xf32, #tpu.memory_space<vmem>>, vector<1x1x16x4xf32>
    %33 = vector.shape_cast %32 : vector<1x1x16x4xf32> to vector<16x4xf32>
    %34 = vector.shape_cast %31 : vector<16x4xf32> to vector<1x1x16x4xf32>
    tpu.vector_store %arg4[%c0_26, %c6, %c0_27, %c0_28], %34 {strides = array<i32>} : memref<1x16x16x4xf32, #tpu.memory_space<vmem>>, vector<1x1x16x4xf32>,
    %35 = vector.extract_strided_slice %22 {offsets = [0, 12], sizes = [16, 4], strides = [1, 1]} : vector<16x16xf32> to vector<16x4xf32>
    %c0_29 = arith.constant 0 : index
    %c7 = arith.constant 7 : index
    %c0_30 = arith.constant 0 : index
    %c0_31 = arith.constant 0 : index
    %36 = vector.load %arg4[%c0_29, %c7, %c0_30, %c0_31] : memref<1x16x16x4xf32, #tpu.memory_space<vmem>>, vector<1x1x16x4xf32>
    %37 = vector.shape_cast %36 : vector<1x1x16x4xf32> to vector<16x4xf32>
    %38 = vector.shape_cast %35 : vector<16x4xf32> to vector<1x1x16x4xf32>
    tpu.vector_store %arg4[%c0_29, %c7, %c0_30, %c0_31], %38 {strides = array<i32>} : memref<1x16x16x4xf32, #tpu.memory_space<vmem>>, vector<1x1x16x4xf32>,
    %c0_32 = arith.constant 0 : index
    %c0_33 = arith.constant 0 : index
    %c32 = arith.constant 32 : index
    %39 = vector.load %arg3[%c0_32, %c0_33, %c32] : memref<1x16x64xf32, #tpu.memory_space<vmem>>, vector<1x16x16xf32>
    %40 = vector.shape_cast %39 : vector<1x16x16xf32> to vector<16x16xf32>
    %cst_34 = arith.constant dense<0.000000e+00> : vector<16x16xf32>
    %41 = tpu.matmul %40, %0, %cst_34 {dimension_numbers = #tpu.dot_dimension_numbers<[1], [0], [0], [1], [0, 0, 1, 1], [], []>} : vector<16x16xf32>, vector<16x16xf32>, vector<16x16xf32> -> vector<16x16xf32>
    %42 = vector.extract_strided_slice %41 {offsets = [0, 0], sizes = [16, 4], strides = [1, 1]} : vector<16x16xf32> to vector<16x4xf32>
    %c0_35 = arith.constant 0 : index
    %c8 = arith.constant 8 : index
    %c0_36 = arith.constant 0 : index
    %c0_37 = arith.constant 0 : index
    %43 = vector.load %arg4[%c0_35, %c8, %c0_36, %c0_37] : memref<1x16x16x4xf32, #tpu.memory_space<vmem>>, vector<1x1x16x4xf32>
    %44 = vector.shape_cast %43 : vector<1x1x16x4xf32> to vector<16x4xf32>
    %45 = vector.shape_cast %42 : vector<16x4xf32> to vector<1x1x16x4xf32>
    tpu.vector_store %arg4[%c0_35, %c8, %c0_36, %c0_37], %45 {strides = array<i32>} : memref<1x16x16x4xf32, #tpu.memory_space<vmem>>, vector<1x1x16x4xf32>,
    %46 = vector.extract_strided_slice %41 {offsets = [0, 4], sizes = [16, 4], strides = [1, 1]} : vector<16x16xf32> to vector<16x4xf32>
    %c0_38 = arith.constant 0 : index
    %c9 = arith.constant 9 : index
    %c0_39 = arith.constant 0 : index
    %c0_40 = arith.constant 0 : index
    %47 = vector.load %arg4[%c0_38, %c9, %c0_39, %c0_40] : memref<1x16x16x4xf32, #tpu.memory_space<vmem>>, vector<1x1x16x4xf32>
    %48 = vector.shape_cast %47 : vector<1x1x16x4xf32> to vector<16x4xf32>
    %49 = vector.shape_cast %46 : vector<16x4xf32> to vector<1x1x16x4xf32>
    tpu.vector_store %arg4[%c0_38, %c9, %c0_39, %c0_40], %49 {strides = array<i32>} : memref<1x16x16x4xf32, #tpu.memory_space<vmem>>, vector<1x1x16x4xf32>,
    %50 = vector.extract_strided_slice %41 {offsets = [0, 8], sizes = [16, 4], strides = [1, 1]} : vector<16x16xf32> to vector<16x4xf32>
    %c0_41 = arith.constant 0 : index
    %c10 = arith.constant 10 : index
    %c0_42 = arith.constant 0 : index
    %c0_43 = arith.constant 0 : index
    %51 = vector.load %arg4[%c0_41, %c10, %c0_42, %c0_43] : memref<1x16x16x4xf32, #tpu.memory_space<vmem>>, vector<1x1x16x4xf32>
    %52 = vector.shape_cast %51 : vector<1x1x16x4xf32> to vector<16x4xf32>
    %53 = vector.shape_cast %50 : vector<16x4xf32> to vector<1x1x16x4xf32>
    tpu.vector_store %arg4[%c0_41, %c10, %c0_42, %c0_43], %53 {strides = array<i32>} : memref<1x16x16x4xf32, #tpu.memory_space<vmem>>, vector<1x1x16x4xf32>,
    %54 = vector.extract_strided_slice %41 {offsets = [0, 12], sizes = [16, 4], strides = [1, 1]} : vector<16x16xf32> to vector<16x4xf32>
    %c0_44 = arith.constant 0 : index
    %c11 = arith.constant 11 : index
    %c0_45 = arith.constant 0 : index
    %c0_46 = arith.constant 0 : index
    %55 = vector.load %arg4[%c0_44, %c11, %c0_45, %c0_46] : memref<1x16x16x4xf32, #tpu.memory_space<vmem>>, vector<1x1x16x4xf32>
    %56 = vector.shape_cast %55 : vector<1x1x16x4xf32> to vector<16x4xf32>
    %57 = vector.shape_cast %54 : vector<16x4xf32> to vector<1x1x16x4xf32>
    tpu.vector_store %arg4[%c0_44, %c11, %c0_45, %c0_46], %57 {strides = array<i32>} : memref<1x16x16x4xf32, #tpu.memory_space<vmem>>, vector<1x1x16x4xf32>,
    %c0_47 = arith.constant 0 : index
    %c0_48 = arith.constant 0 : index
    %c48 = arith.constant 48 : index
    %58 = vector.load %arg3[%c0_47, %c0_48, %c48] : memref<1x16x64xf32, #tpu.memory_space<vmem>>, vector<1x16x16xf32>
    %59 = vector.shape_cast %58 : vector<1x16x16xf32> to vector<16x16xf32>
    %cst_49 = arith.constant dense<0.000000e+00> : vector<16x16xf32>
    %60 = tpu.matmul %59, %0, %cst_49 {dimension_numbers = #tpu.dot_dimension_numbers<[1], [0], [0], [1], [0, 0, 1, 1], [], []>} : vector<16x16xf32>, vector<16x16xf32>, vector<16x16xf32> -> vector<16x16xf32>
    %61 = vector.extract_strided_slice %60 {offsets = [0, 0], sizes = [16, 4], strides = [1, 1]} : vector<16x16xf32> to vector<16x4xf32>
    %c0_50 = arith.constant 0 : index
    %c12 = arith.constant 12 : index
    %c0_51 = arith.constant 0 : index
    %c0_52 = arith.constant 0 : index
    %62 = vector.load %arg4[%c0_50, %c12, %c0_51, %c0_52] : memref<1x16x16x4xf32, #tpu.memory_space<vmem>>, vector<1x1x16x4xf32>
    %63 = vector.shape_cast %62 : vector<1x1x16x4xf32> to vector<16x4xf32>
    %64 = vector.shape_cast %61 : vector<16x4xf32> to vector<1x1x16x4xf32>
    tpu.vector_store %arg4[%c0_50, %c12, %c0_51, %c0_52], %64 {strides = array<i32>} : memref<1x16x16x4xf32, #tpu.memory_space<vmem>>, vector<1x1x16x4xf32>,
    %65 = vector.extract_strided_slice %60 {offsets = [0, 4], sizes = [16, 4], strides = [1, 1]} : vector<16x16xf32> to vector<16x4xf32>
    %c0_53 = arith.constant 0 : index
    %c13 = arith.constant 13 : index
    %c0_54 = arith.constant 0 : index
    %c0_55 = arith.constant 0 : index
    %66 = vector.load %arg4[%c0_53, %c13, %c0_54, %c0_55] : memref<1x16x16x4xf32, #tpu.memory_space<vmem>>, vector<1x1x16x4xf32>
    %67 = vector.shape_cast %66 : vector<1x1x16x4xf32> to vector<16x4xf32>
    %68 = vector.shape_cast %65 : vector<16x4xf32> to vector<1x1x16x4xf32>
    tpu.vector_store %arg4[%c0_53, %c13, %c0_54, %c0_55], %68 {strides = array<i32>} : memref<1x16x16x4xf32, #tpu.memory_space<vmem>>, vector<1x1x16x4xf32>,
    %69 = vector.extract_strided_slice %60 {offsets = [0, 8], sizes = [16, 4], strides = [1, 1]} : vector<16x16xf32> to vector<16x4xf32>
    %c0_56 = arith.constant 0 : index
    %c14 = arith.constant 14 : index
    %c0_57 = arith.constant 0 : index
    %c0_58 = arith.constant 0 : index
    %70 = vector.load %arg4[%c0_56, %c14, %c0_57, %c0_58] : memref<1x16x16x4xf32, #tpu.memory_space<vmem>>, vector<1x1x16x4xf32>
    %71 = vector.shape_cast %70 : vector<1x1x16x4xf32> to vector<16x4xf32>
    %72 = vector.shape_cast %69 : vector<16x4xf32> to vector<1x1x16x4xf32>
    tpu.vector_store %arg4[%c0_56, %c14, %c0_57, %c0_58], %72 {strides = array<i32>} : memref<1x16x16x4xf32, #tpu.memory_space<vmem>>, vector<1x1x16x4xf32>,
    %73 = vector.extract_strided_slice %60 {offsets = [0, 12], sizes = [16, 4], strides = [1, 1]} : vector<16x16xf32> to vector<16x4xf32>
    %c0_59 = arith.constant 0 : index
    %c15 = arith.constant 15 : index
    %c0_60 = arith.constant 0 : index
    %c0_61 = arith.constant 0 : index
    %74 = vector.load %arg4[%c0_59, %c15, %c0_60, %c0_61] : memref<1x16x16x4xf32, #tpu.memory_space<vmem>>, vector<1x1x16x4xf32>
    %75 = vector.shape_cast %74 : vector<1x1x16x4xf32> to vector<16x4xf32>
    %76 = vector.shape_cast %73 : vector<16x4xf32> to vector<1x1x16x4xf32>
    tpu.vector_store %arg4[%c0_59, %c15, %c0_60, %c0_61], %76 {strides = array<i32>} : memref<1x16x16x4xf32, #tpu.memory_space<vmem>>, vector<1x1x16x4xf32>,
    return
  }
  func.func @transform_0(%arg0: i32, %arg1: i32) -> (i32, i32) {
    %c0_i32 = arith.constant 0 : i32
    %c0_i32_0 = arith.constant 0 : i32
    %c0_i32_1 = arith.constant 0 : i32
    return %c0_i32, %c0_i32_0 : i32, i32
  }
  func.func @transform_1(%arg0: i32, %arg1: i32) -> (i32, i32, i32) {
    %c0_i32 = arith.constant 0 : i32
    %c0_i32_0 = arith.constant 0 : i32
    return %arg0, %arg1, %c0_i32 : i32, i32, i32
  }
  func.func @transform_2(%arg0: i32, %arg1: i32) -> (i32, i32, i32, i32) {
    %c0_i32 = arith.constant 0 : i32
    %c0_i32_0 = arith.constant 0 : i32
    %c0_i32_1 = arith.constant 0 : i32
    return %arg0, %c0_i32, %arg1, %c0_i32_0 : i32, i32, i32, i32
  }
}

</mosaic_0001>

<bundles_post_ra>
// kernel: tpu_custom_call.1
= control target key start
LH: loop header
LB: loop body
LE: loop exit
PB: predicated region body
PF: predicated region fallthrough
CT: control target
= control target key end

     0   :  { %7 = vsyncpa [#allocation3], 0  ;;  %s1379_s0 = inlined_call_operand.hbm [shape: f32[16,16], index: 0, kind: input, shape index: {}]   ;;  %s1380_s1 = inlined_call_operand.hbm [shape: f32[2,16,64], index: 1, kind: input, shape index: {}]   ;;  %s1381_s2 = inlined_call_operand.vmem [shape: f32[2,16,16,4], index: 2, kind: output, shape index: {}]  }
   0x1   :  { %8 = vsyncpa [#allocation5], 0 }
   0x2   :  { %10 = vsyncpa [#allocation5 + $0x1], 0  ;;  %s1117_s9 = smov 0   ;;  %s1119_s10 = smov 0  }
   0x3   :  { %s1121_s11 = smov 0   ;;  %s1123_s12 = smov 0  }
   0x4   :  { %s1125_s13 = smov 0   ;;  %s1127_s14 = smov 0  }
   0x5 LB: > { %s789_s15 = sadd.s32 4294967295, %s1090_s14   ;;  %p71_p0 = scmp.ne.s32.totalorder %s1074_s10, %s1070_s9  ;;  %s1090_s14 = sphi %s1127_s14, %s16_s14   ;;  %s1086_s13 = sphi %s1125_s13, %s1398_s13   ;;  %s1082_s12 = sphi %s1123_s12, %s1397_s12   ;;  %s1078_s11 = sphi %s1121_s11, %s1396_s11   ;;  %s1074_s10 = sphi %s1119_s10, %s1395_s10   ;;  %s1070_s9 = sphi %s1117_s9, %s1394_s9  }
   0x6   : > { %p1147_p1 = scmp.eq.s32.totalorder %s789_s15, 0  ;;  %p791_p2 = scmp.ge.s32.totalorder %s1090_s14, 1 }
   0x7   : > { %p110_p3 = scmp.lt.s32.totalorder %s1090_s14, 3  ;;  %s1092_s19 = smov [#allocation2]  }
   0x8   : > { %s1386_s16 = scalar_select %p1147_p1, 1, 0 }
   0x9   : > { %p1155_p4 = por %p1147_p1, %p71_p0  ;;  %p1159_p5 = pnand %p791_p2, %p110_p3 }
   0xa   : > { %s122_s20 = sshll.u32 %s1092_s19, 4  ;;  %s28_s22 = sadd.s32 1, %s1086_s13  ;;  %s123_s20 = int_to_ptr.vmem [resolvable:$true] %s122_s20 }
   0xb   : > { %s1387_s17 = scalar_select %p1155_p4, 1, 0 }
   0xc   : > { %s1388_s18 = scalar_select %p1159_p5, 1, 0 }
   0xd   : > { %p910_p6 = pneg %p1159_p5  ;;  %s978_s25 = scalar_lea.hbm %s1379_s0, 256 }
   0xe   : > { %p979_p8 = scmp.ne.s32.totalorder %s1379_s0, %s978_s25  ;;  %p985_p12 = scmp.lt.u32.totalorder %s978_s25, %s1379_s0 }
   0xf   : > { %p1167_p7 = pnand %p910_p6, %p1147_p1 }
  0x11   : > { %p980_p9 = pneg %p1167_p7 }
  0x13   : > { %p981_p10 = pnand %p980_p9, %p979_p8 }
  0x15   : > { %p982_p11 = pneg %p981_p10 }
  0x17   : > { %p987_p13 = pnand %p985_p12, %p982_p11 }
  0x19   : > { %990 = shalt.err (!%p987_p13)
}
  0x1a   : > { %s991_s30 = scalar_lea.vmem %s123_s20, 256  ;;  %p999_p6 = scmp.lt.s32.totalorder %s123_s20, %s123_s20 }
  0x1b   : > { %p992_p0 = scmp.ne.s32.totalorder %s123_s20, %s991_s30  ;;  %p1000_p4 = scmp.lt.s32.totalorder %s991_s30, %s991_s30 }
  0x1d   : > { %p994_p2 = pnand %p992_p0, %p980_p9  ;;  %p1001_p1 = por %p1000_p4, %p999_p6 }
  0x1f   : > { %p995_p3 = pneg %p994_p2 }
  0x21   : > { %p1002_p5 = pnand %p1001_p1, %p995_p3 }
  0x23   : > { %1005 = shalt.err (!%p1002_p5)
}
  0x24   : > { %s1093_s3 = smov 128   ;;  %s1094_s4 = smov 8  }
  0x25   : > { %913 = dma.hbm_to_vmem [thread:$0]  (!%p1167_p7), %s1379_s0, 256, %s123_s20, [#allocation3], %s1093_s3, %s1093_s3, %s1094_s4  }
  0x26   : > { %p30_p1 = scmp.ge.s32.totalorder %s28_s22, 2  ;;  %s58_s7 = sadd.s32 1, %s1078_s11 }
  0x27   : > { %p65_p4 = scmp.ne.s32.totalorder %s1078_s11, %s1074_s10  ;;  %p66_p5 = scmp.eq.s32.totalorder %s1090_s14, 0 }
  0x28   : > { %s1400_s22 = smov (%p30_p1, %s28_s22), 0  ;;  %p919_p9 = scmp.lt.s32.totalorder %s1090_s14, 2 }
  0x29   : > { %p67_p8 = por %p66_p5, %p65_p4  ;;  %s53_s8 = ssub.s32 %s1086_s13, %s1400_s22 }
  0x2a   : > { %s136_s9 = sand.u32 1, %s1078_s11   ;;  %p56_p10 = scmp.eq.s32.totalorder %s53_s8, 0 }
  0x2b   : > { %s794_s15 = sshll.u32 %s136_s9, 4  ;;  %s842_s19 = sshll.u32 %s1086_s13, 8 }
  0x2c   : > { %s1203_s21 = scalar_select %p56_p10, %s1078_s11, %s58_s7  }
  0x2d   : > { %s1208_s20 = scalar_lea.hbm %s1380_s1, %s842_s19  ;;  %s140_s25 = scalar_lea.vmem [#allocation4], %s794_s15 }
  0x2e   : > { %s149_s26 = sshll.u32 %s140_s25, 4  ;;  %p1210_p7 = pnand %p919_p9, %p67_p8  ;;  %s1214_s26 = int_to_ptr.vmem [resolvable:$true] %s149_s26 }
  0x2f   : > { %s1216_s28 = scalar_lea.sflag [#allocation5], %s136_s9  ;;  %s1006_s29 = scalar_lea.hbm %s1208_s20, 256 }
  0x30   : > { %p1007_p11 = scmp.ne.s32.totalorder %s1208_s20, %s1006_s29  ;;  %p1008_p12 = pneg %p1210_p7 }
  0x31   : > { %s1011_s6 = scalar_lea.hbm %s1380_s1, 512  ;;  %p1012_p2 = scmp.lt.u32.totalorder %s1208_s20, %s1380_s1 }
  0x32   : > { %p1009_p13 = pnand %p1008_p12, %p1007_p11  ;;  %p1013_p3 = scmp.lt.u32.totalorder %s1011_s6, %s1006_s29 }
  0x33   : > { %p1015_p1 = scmp.lt.u32.totalorder %s1006_s29, %s1208_s20 }
  0x34   : > { %p1010_p0 = pneg %p1009_p13  ;;  %p1014_p6 = por %p1013_p3, %p1012_p2 }
  0x36   : > { %p1016_p4 = por %p1015_p1, %p1014_p6 }
  0x38   : > { %p1017_p5 = pnand %p1016_p4, %p1010_p0 }
  0x3a   : > { %1020 = shalt.err (!%p1017_p5)
}
  0x3b   : > { %s1021_s9 = scalar_lea.vmem %s1214_s26, 256  ;;  %s1095_s15 = smov [#allocation4]  }
  0x3c   : > { %p1022_p8 = scmp.ne.s32.totalorder %s1214_s26, %s1021_s9  ;;  %s1026_s19 = sshll.u32 %s1095_s15, 4  ;;  %s1027_s19 = int_to_ptr.vmem [resolvable:$false] %s1026_s19 }
  0x3d   : > { %s1028_s23 = scalar_lea.vmem %s1027_s19, 512  ;;  %p1029_p11 = scmp.lt.s32.totalorder %s1214_s26, %s1027_s19 }
  0x3e   : > { %p1024_p9 = pnand %p1022_p8, %p1008_p12  ;;  %p1030_p13 = scmp.lt.s32.totalorder %s1028_s23, %s1021_s9 }
  0x40   : > { %p1025_p10 = pneg %p1024_p9  ;;  %p1031_p2 = por %p1030_p13, %p1029_p11 }
  0x42   : > { %p1032_p3 = pnand %p1031_p2, %p1025_p10 }
  0x44   : > { %1035 = shalt.err (!%p1032_p3)
}
  0x45   : > { %917 = dma.hbm_to_vmem [thread:$0]  (!%p1210_p7), %s1208_s20, 256, %s1214_s26, %s1216_s28, %s1093_s3, %s1093_s3, %s1094_s4  }
  0x46   : > { %p1391_p12 = scmp.ne.s32.totalorder %s1388_s18, 0 }
  0x47   : > { %p1392_p0 = scmp.ne.s32.totalorder (!%p1391_p12), %s1386_s16, 0 }
  0x48   : > { %161 = sbr.rel (%p1391_p12) target bundleno = 565 (0x235), region = 28 }
  0x4f   : > { %1061 = dma.done.wait (%p1392_p0), [#allocation3], 256  }
  0x50   : > { %1063 = vsyncadd (%p1392_p0), [#allocation3], 4294967040  ;;  %s167_s24 = sand.u32 1, %s1074_s10   ;;  %p1393_p6 = scmp.ne.s32.totalorder %s1387_s17, 0 }
  0x51   : > { %s799_s25 = sshll.u32 %s167_s24, 4  ;;  %s168_s27 = scalar_lea.sflag [#allocation5], %s167_s24 }
  0x52   : > { %s171_s29 = scalar_lea.vmem [#allocation4], %s799_s25 }
  0x53   : > { %1065 = dma.done.wait (%p1393_p6), %s168_s27, 256  }
  0x54   : > { %1067 = vsyncadd (%p1393_p6), %s168_s27, 4294967040  ;;  %vm211_vm0 = vcmask 130048   ;;  %v325_v0 = vld [vmem:[%s171_s29] sm:$0xff]  ;;  %s1096_s18 = smov 112   ;;  %s1097_s3 = smov 96   ;;  %v208_v2 = vld [vmem:[#allocation2 + $0x8] sm:$0xff] }
  0x55   : > { %v207_v1 = vld [vmem:[#allocation2] sm:$0xff]  ;;  %329 = vrot.lane.b32.xlu0 %v325_v0, %s1096_s18  ;;  %448 = vrot.lane.b32.xlu1 %v325_v0, %s1097_s3  ;;  %v326_v3 = vld [vmem:[%s171_s29 + $0x8] sm:$0xff]  ;;  %s1098_s16 = smov 80   ;;  %p198_p7 = scmp.lt.s32.totalorder %s1082_s12, 1  ;;  %vm293_vm1 = vcmask 31744  }
  0x56   : > { %v888_v4 = vpack.c.bf16 %v208_v2, %v207_v1  ;;  %864 = vmatprep.mubr.msk.f32.mxu0 %vm211_vm0, %v325_v0  ;;  %s1099_s28 = smov 124   ;;  %s1101_s30 = smov 116  }
  0x57   : > { %s1402_s12 = smov (!%p198_p7, %s1082_s12), 1 }
  0x58   : > { %889 = vmatprep.subr.bf16.mxu0 %v888_v4  ;;  %893 = vmatprep.subr.bf16.mxu1 %v888_v4  ;;  %s843_s17 = sshll.u32 %s1402_s12, 8  ;;  %s1100_s12 = smov 120  }
  0x59   : > { %331 = vrot.lane.b32.xlu0 %v326_v3, %s1096_s18  ;;  %567 = vrot.lane.b32.xlu1 %v325_v0, %s1098_s16  ;;  %s1271_s26 = scalar_lea.vmem %s1381_s2, %s843_s17 }
  0x5a   : > { %891 = vmatpush3.bf16.msra.mxu0 %v888_v4  ;;  %895 = vmatpush3.bf16.msra.mxu1 %v888_v4 }
  0x5b   : > { %897 = vmatprep.subr.bf16.mxu0 %v888_v4  ;;  %901 = vmatprep.subr.bf16.mxu1 %v888_v4 }
  0x5d   : > { %450 = vrot.lane.b32.xlu0 %v326_v3, %s1097_s3  ;;  %569 = vrot.lane.b32.xlu1 %v326_v3, %s1098_s16 }
  0x5e   : > { %865 = vmatmul.mubr.msk.f32.vlgmr.msra.gmra.mrb[0].mxu0 %vm211_vm0, %v326_v3 }
  0x5f   : > { %899 = vmatpush3.bf16.msra.mxu0 %v888_v4 }
  0xc7   : > { %v330_v5 = vpop.permute.xlu0 %329  ;;  %v449_v6 = vpop.permute.xlu1 %448 }
  0xc8   : > { %871 = vmatprep.mubr.msk.f32.mxu1 %vm211_vm0, %v330_v5  ;;  %878 = vmatprep.mubr.msk.f32.mxu0 %vm211_vm0, %v449_v6 }
  0xcb   : > { %v332_v7 = vpop.permute.xlu0 %331  ;;  %v568_v8 = vpop.permute.xlu1 %567 }
  0xcc   : > { %872 = vmatmul.mubr.msk.f32.vlgmr.msra.gmra.mrb[0].mxu1 %vm211_vm0, %v332_v7 }
  0xcd   : > { %903 = vmatpush3.bf16.msra.mxu1 %v888_v4  ;;  %885 = vmatprep.mubr.msk.f32.mxu1 %vm211_vm0, %v568_v8 }
  0xcf   : > { %v451_v9 = vpop.permute.xlu0 %450  ;;  %v570_v10 = vpop.permute.xlu1 %569 }
  0xd0   : > { %879 = vmatmul.mubr.msk.f32.vlgmr.msra.gmra.mrb[2].mxu0 %vm211_vm0, %v451_v9  ;;  %886 = vmatmul.mubr.msk.f32.vlgmr.msra.gmra.mrb[2].mxu1 %vm211_vm0, %v570_v10 }
 0x131   : > { %v866_v11 = vpop.f32.mrb[0].mxu0 }
 0x132   : > { %295 = vst.msk [vmem:[%s1271_s26 + $0x8] sm:$0xff] %vm293_vm1, %v866_v11  ;;  %v284_v12 = vpop.f32.mrb[1].mxu0  ;;  %300 = vrot.lane.b32.xlu1 %v866_v11, %s1099_s28 }
 0x133   : > { %294 = vst.msk [vmem:[%s1271_s26] sm:$0xff] %vm293_vm1, %v284_v12  ;;  %298 = vrot.lane.b32.xlu0 %v284_v12, %s1099_s28 }
 0x136   : > { %309 = vrot.lane.b32.xlu1 %v866_v11, %s1100_s12 }
 0x137   : > { %307 = vrot.lane.b32.xlu0 %v284_v12, %s1100_s12 }
 0x13a   : > { %318 = vrot.lane.b32.xlu1 %v866_v11, %s1101_s30 }
 0x13b   : > { %316 = vrot.lane.b32.xlu0 %v284_v12, %s1101_s30 }
 0x19f   : > { %v873_v13 = vpop.f32.mrb[0].mxu1 }
 0x1a0   : > { %813 = vst.msk [vmem:[%s1271_s26 + $0x48] sm:$0xff] %vm293_vm1, %v873_v13  ;;  %v403_v14 = vpop.f32.mrb[1].mxu1  ;;  %419 = vrot.lane.b32.xlu1 %v873_v13, %s1099_s28 }
 0x1a1   : > { %812 = vst.msk [vmem:[%s1271_s26 + $0x40] sm:$0xff] %vm293_vm1, %v403_v14  ;;  %417 = vrot.lane.b32.xlu0 %v403_v14, %s1099_s28 }
 0x1a3   : > { %v880_v15 = vpop.f32.mrb[2].mxu0  ;;  %v887_v16 = vpop.f32.mrb[2].mxu1 }
 0x1a4   : > { %428 = vrot.lane.b32.xlu1 %v873_v13, %s1100_s12  ;;  %823 = vst.msk [vmem:[%s1271_s26 + $0x88] sm:$0xff] %vm293_vm1, %v880_v15  ;;  %v522_v17 = vpop.f32.mrb[3].mxu0  ;;  %833 = vst.msk [vmem:[%s1271_s26 + $0xc8] sm:$0xff] %vm293_vm1, %v887_v16  ;;  %v641_v18 = vpop.f32.mrb[3].mxu1 }
 0x1a5   : > { %426 = vrot.lane.b32.xlu0 %v403_v14, %s1100_s12  ;;  %822 = vst.msk [vmem:[%s1271_s26 + $0x80] sm:$0xff] %vm293_vm1, %v522_v17  ;;  %832 = vst.msk [vmem:[%s1271_s26 + $0xc0] sm:$0xff] %vm293_vm1, %v641_v18  ;;  %v301_v19 = vpop.permute.xlu1 %300  ;;  %v299_v20 = vpop.permute.xlu0 %298 }
 0x1a6   : > { %805 = vst.msk [vmem:[%s1271_s26 + $0x18] sm:$0xff] %vm293_vm1, %v301_v19  ;;  %804 = vst.msk [vmem:[%s1271_s26 + $0x10] sm:$0xff] %vm293_vm1, %v299_v20 }
 0x1a8   : > { %437 = vrot.lane.b32.xlu1 %v873_v13, %s1101_s30 }
 0x1a9   : > { %435 = vrot.lane.b32.xlu0 %v403_v14, %s1101_s30  ;;  %v310_v21 = vpop.permute.xlu1 %309  ;;  %v308_v22 = vpop.permute.xlu0 %307 }
 0x1aa   : > { %807 = vst.msk [vmem:[%s1271_s26 + $0x28] sm:$0xff] %vm293_vm1, %v310_v21  ;;  %806 = vst.msk [vmem:[%s1271_s26 + $0x20] sm:$0xff] %vm293_vm1, %v308_v22 }
 0x1ac   : > { %538 = vrot.lane.b32.xlu1 %v880_v15, %s1099_s28 }
 0x1ad   : > { %536 = vrot.lane.b32.xlu0 %v522_v17, %s1099_s28  ;;  %v319_v23 = vpop.permute.xlu1 %318  ;;  %v317_v24 = vpop.permute.xlu0 %316 }
 0x1ae   : > { %809 = vst.msk [vmem:[%s1271_s26 + $0x38] sm:$0xff] %vm293_vm1, %v319_v23  ;;  %808 = vst.msk [vmem:[%s1271_s26 + $0x30] sm:$0xff] %vm293_vm1, %v317_v24 }
 0x1b0   : > { %547 = vrot.lane.b32.xlu1 %v880_v15, %s1100_s12 }
 0x1b1   : > { %545 = vrot.lane.b32.xlu0 %v522_v17, %s1100_s12 }
 0x1b4   : > { %556 = vrot.lane.b32.xlu1 %v880_v15, %s1101_s30 }
 0x1b5   : > { %554 = vrot.lane.b32.xlu0 %v522_v17, %s1101_s30 }
 0x1b8   : > { %657 = vrot.lane.b32.xlu1 %v887_v16, %s1099_s28 }
 0x1b9   : > { %655 = vrot.lane.b32.xlu0 %v641_v18, %s1099_s28 }
 0x1bc   : > { %666 = vrot.lane.b32.xlu1 %v887_v16, %s1100_s12 }
 0x1bd   : > { %664 = vrot.lane.b32.xlu0 %v641_v18, %s1100_s12 }
 0x1c0   : > { %675 = vrot.lane.b32.xlu1 %v887_v16, %s1101_s30 }
 0x1c1   : > { %673 = vrot.lane.b32.xlu0 %v641_v18, %s1101_s30 }
 0x212   : > { %v420_v25 = vpop.permute.xlu1 %419 }
 0x213   : > { %815 = vst.msk [vmem:[%s1271_s26 + $0x58] sm:$0xff] %vm293_vm1, %v420_v25  ;;  %v418_v26 = vpop.permute.xlu0 %417 }
 0x214   : > { %814 = vst.msk [vmem:[%s1271_s26 + $0x50] sm:$0xff] %vm293_vm1, %v418_v26 }
 0x216   : > { %v429_v27 = vpop.permute.xlu1 %428 }
 0x217   : > { %817 = vst.msk [vmem:[%s1271_s26 + $0x68] sm:$0xff] %vm293_vm1, %v429_v27  ;;  %v427_v28 = vpop.permute.xlu0 %426 }
 0x218   : > { %816 = vst.msk [vmem:[%s1271_s26 + $0x60] sm:$0xff] %vm293_vm1, %v427_v28 }
 0x21a   : > { %v438_v29 = vpop.permute.xlu1 %437 }
 0x21b   : > { %819 = vst.msk [vmem:[%s1271_s26 + $0x78] sm:$0xff] %vm293_vm1, %v438_v29  ;;  %v436_v30 = vpop.permute.xlu0 %435 }
 0x21c   : > { %818 = vst.msk [vmem:[%s1271_s26 + $0x70] sm:$0xff] %vm293_vm1, %v436_v30 }
 0x21e   : > { %v539_v31 = vpop.permute.xlu1 %538 }
 0x21f   : > { %825 = vst.msk [vmem:[%s1271_s26 + $0x98] sm:$0xff] %vm293_vm1, %v539_v31  ;;  %v537_v32 = vpop.permute.xlu0 %536 }
 0x220   : > { %824 = vst.msk [vmem:[%s1271_s26 + $0x90] sm:$0xff] %vm293_vm1, %v537_v32 }
 0x222   : > { %v548_v33 = vpop.permute.xlu1 %547 }
 0x223   : > { %827 = vst.msk [vmem:[%s1271_s26 + $0xa8] sm:$0xff] %vm293_vm1, %v548_v33  ;;  %v546_v34 = vpop.permute.xlu0 %545 }
 0x224   : > { %826 = vst.msk [vmem:[%s1271_s26 + $0xa0] sm:$0xff] %vm293_vm1, %v546_v34 }
 0x226   : > { %v557_v35 = vpop.permute.xlu1 %556 }
 0x227   : > { %829 = vst.msk [vmem:[%s1271_s26 + $0xb8] sm:$0xff] %vm293_vm1, %v557_v35  ;;  %v555_v36 = vpop.permute.xlu0 %554 }
 0x228   : > { %828 = vst.msk [vmem:[%s1271_s26 + $0xb0] sm:$0xff] %vm293_vm1, %v555_v36 }
 0x22a   : > { %v658_v37 = vpop.permute.xlu1 %657 }
 0x22b   : > { %835 = vst.msk [vmem:[%s1271_s26 + $0xd8] sm:$0xff] %vm293_vm1, %v658_v37  ;;  %v656_v38 = vpop.permute.xlu0 %655 }
 0x22c   : > { %834 = vst.msk [vmem:[%s1271_s26 + $0xd0] sm:$0xff] %vm293_vm1, %v656_v38 }
 0x22e   : > { %v667_v39 = vpop.permute.xlu1 %666 }
 0x22f   : > { %837 = vst.msk [vmem:[%s1271_s26 + $0xe8] sm:$0xff] %vm293_vm1, %v667_v39  ;;  %v665_v40 = vpop.permute.xlu0 %664 }
 0x230   : > { %836 = vst.msk [vmem:[%s1271_s26 + $0xe0] sm:$0xff] %vm293_vm1, %v665_v40 }
 0x232   : > { %v676_v41 = vpop.permute.xlu1 %675 }
 0x233   : > { %839 = vst.msk [vmem:[%s1271_s26 + $0xf8] sm:$0xff] %vm293_vm1, %v676_v41  ;;  %v674_v42 = vpop.permute.xlu0 %673 }
 0x234   : > { %838 = vst.msk [vmem:[%s1271_s26 + $0xf0] sm:$0xff] %vm293_vm1, %v674_v42 }
 0x235 PF: > { %s16_s14 = sadd.s32 1, %s1090_s14   ;;  %s1394_s9 = smov %s1074_s10 }
 0x236   : > { %p13_p1 = scmp.ge.s32.totalorder %s16_s14, 4   ;;  %s1395_s10 = smov %s1078_s11 }
 0x237   : > { %s1396_s11 = smov %s1203_s21  ;;  %s1397_s12 = smov %s1086_s13 }
 0x238   : > { %s1398_s13 = smov %s1400_s22  ;;  %15 = sbr.rel (!%p13_p1) target bundleno = 5 (0x5), region = 88 }
 0x23f   :  { %712 = vsyncpa [#allocation3], 1 }
 0x240   :  { %714 = vsyncpa [#allocation3 + $0x1], 1 }
 0x241   :  { %715 = vsyncpa [#allocation5], 1 }
 0x242   :  { %717 = vsyncpa [#allocation5 + $0x1], 1 }

</bundles_post_ra>
